<compile_context>
chip_gen: v7x
topology: tpu7x:2x2x1
jax: 0.10.0
libtpu: 0.0.40
codegen_flags: <defaults>
</compile_context>

<pallas_src>
import functools

import jax
import jax.numpy as jnp
from jax.experimental import pallas as pl
from jax.experimental.pallas import tpu as pltpu


_SMALL_BYPASS_BYTES = 1 << 20          # below this, XLA fused elementwise wins
_TILE_BYTES = 4 * 1024 * 1024          # ~4 MiB per in/out buffer (safe on v5e/v6e/v7x)
_VMEM_LIMIT_BYTES = 32 * 1024 * 1024   # explicit: v5e default scoped VMEM is only 16 MiB
_MIN_GRID_STEPS = 4                    # >=2 so v7x's two TCs both stream; 4 for slack


def _scale_mul_kernel(h_ref, s_ref, o_ref):
    # h_ref: (TM, H) hidden tile; s_ref: (1, H) per-channel scale; o_ref: (TM, H).
    # Pure mem-bound body: one broadcast vmul per vreg, cast to the output dtype.
    o_ref[...] = (h_ref[...] * s_ref[...]).astype(o_ref.dtype)


def _sublane_multiple(dtype) -> int:
    # Native second-minor packing: 8 rows for 4-byte, 16 for 2-byte, 32 for 1-byte.
    return 8 * max(1, 4 // jnp.dtype(dtype).itemsize)


@functools.lru_cache(maxsize=1)
def _bf16_native_vpu() -> bool:
    # v6e/v7x VALUs handle bf16 natively; on v4/v5 bf16 math just adds pack/unpack.
    try:
        kind = jax.devices()[0].device_kind.lower()
        return not ("v4" in kind or "v5" in kind)
    except Exception:
        return False


def _apply_channel_scale(hidden, scale_f32, *, max_rows_per_tile=None,
                         small_bypass_bytes=_SMALL_BYPASS_BYTES):
    """Returns hidden * scale[None, None, :], cast back to hidden.dtype."""
    B, S, H = hidden.shape
    N = B * S
    itemsize = jnp.dtype(hidden.dtype).itemsize
    stream_bytes = N * H * itemsize

    # (a) Tiny streams (decode-style shapes): kernel launch + per-step overhead
    #     exceeds the memory time; XLA's fused elementwise is already at roofline
    #     and can additionally fuse with neighbours.
    # (b) Ragged lane dim (H % 128 != 0): a Pallas out-block would need masked
    #     vst.msk partial stores, and padding in the wrapper would cost a full
    #     extra HBM pass, so fall back to XLA instead of silently regressing.
    if stream_bytes <= small_bypass_bytes or H % 128 != 0:
        out = hidden.astype(jnp.float32) * scale_f32[None, None, :]
        return out.astype(hidden.dtype)

    compute_dtype = (hidden.dtype
                     if (hidden.dtype == jnp.bfloat16 and _bf16_native_vpu())
                     else jnp.float32)

    h2 = hidden.reshape(N, H)
    scale2 = scale_f32.reshape(1, H).astype(compute_dtype)

    # Row-tile size: ~4 MiB per buffer.  Double-buffered input + output tiles stay
    # well under the 32 MiB scoped-VMEM request (valid on v5e/v6e, and within the
    # 64 MiB per-TC VMEM ceiling on v7x).
    pack = _sublane_multiple(hidden.dtype)
    bytes_per_row = max(1, H * itemsize)
    tm = max(pack, (_TILE_BYTES // bytes_per_row) // pack * pack)
    if max_rows_per_tile is not None:
        tm = min(tm, max(pack, (max_rows_per_tile // pack) * pack))
    # Guarantee >= _MIN_GRID_STEPS grid steps so the "parallel" axis can actually
    # shard across v7x's two TensorCores (no-op on v5e/v6e).
    cap = -(-N // _MIN_GRID_STEPS)            # cdiv(N, steps)
    cap = max(pack, -(-cap // pack) * pack)   # round up to the packing multiple
    tm = min(tm, cap)
    if tm >= N:
        tm = N  # block equal to the full array dim is always a legal block shape

    grid = (pl.cdiv(N, tm),)

    out = pl.pallas_call(
        _scale_mul_kernel,
        out_shape=jax.ShapeDtypeStruct((N, H), hidden.dtype),
        grid_spec=pltpu.PrefetchScalarGridSpec(
            num_scalar_prefetch=0,
            grid=grid,
            in_specs=[
                pl.BlockSpec((tm, H), lambda i: (i, 0)),   # streaming hidden tile
                pl.BlockSpec((1, H), lambda i: (0, 0)),    # VMEM-resident scale
            ],
            out_specs=pl.BlockSpec((tm, H), lambda i: (i, 0)),
        ),
        compiler_params=pltpu.CompilerParams(
            dimension_semantics=("parallel",),             # megacore on v7x
            vmem_limit_bytes=_VMEM_LIMIT_BYTES,
        ),
        cost_estimate=pl.CostEstimate(
            flops=N * H,
            transcendentals=0,
            bytes_accessed=2 * stream_bytes + H * jnp.dtype(compute_dtype).itemsize,
        ),
    )(h2, scale2)
    return out.reshape(B, S, H)


class ResidualMemoryLayerPallas:
    """JAX/Pallas port of the MEMOIR ResidualMemoryLayer forward pass."""

    def __init__(self, hidden_size: int, max_edits: int = 16,
                 sparsity_ratio: float = 0.01):
        self.hidden_size = hidden_size
        self.max_edits = max_edits
        self.sparsity_ratio = sparsity_ratio
        # nn.Parameter(torch.zeros(max_edits, hidden_size))
        self.edit_weights = jnp.zeros((max_edits, hidden_size), jnp.float32)
        # Host-side activity mirror: no device->host readback in forward()/add_edit().
        self._edit_active_host = [False] * max_edits
        self.edit_metadata = {}
        self.total_edits_made = 0
        self._version = 0          # bumped on any edit-state change
        self._scale_cache = {}     # (edit_key, version) -> (mask_obj, scale)

    @property
    def edit_active(self):
        # Device-array view for API parity with the torch buffer; never read back.
        return jnp.asarray(self._edit_active_host, dtype=jnp.bool_)

    # ------- bookkeeping (plain Python, mirrors add_edit / remove_edit) -----
    def add_edit(self, edit_id: str, edit_mask, weight_row=None, metadata=None):
        free = [i for i, a in enumerate(self._edit_active_host) if not a]
        if not free:
            raise RuntimeError("No available edit slots")
        slot = free[0]
        self.edit_metadata[edit_id] = {"slot": slot, "mask": edit_mask,
                                       "metadata": metadata or {}}
        self._edit_active_host[slot] = True
        if weight_row is not None:
            self.edit_weights = self.edit_weights.at[slot].set(
                jnp.asarray(weight_row, jnp.float32))
        self.total_edits_made += 1
        self._version += 1
        self._scale_cache.clear()
        return slot

    def remove_edit(self, edit_id: str) -> bool:
        if edit_id not in self.edit_metadata:
            return False
        slot = self.edit_metadata[edit_id]["slot"]
        self._edit_active_host[slot] = False
        self.edit_weights = self.edit_weights.at[slot].set(0.0)
        del self.edit_metadata[edit_id]
        self._version += 1
        self._scale_cache.clear()
        return True

    # ------- channel-scale precompute (cached; no per-call host sync) -------
    def _channel_scale(self, edit_mask, edit_id):
        """scale[h] = mask[h] * (W[slot, h]  or  sum over active slots of W[:, h])."""
        use_single = (edit_id is not None and edit_id in self.edit_metadata
                      and self._edit_active_host[self.edit_metadata[edit_id]["slot"]])
        cache_key = (edit_id if use_single else None, self._version)
        entry = self._scale_cache.get(cache_key)
        if entry is not None and entry[0] is edit_mask:
            return entry[1]
        mask_f32 = jnp.asarray(edit_mask, jnp.float32)
        if use_single:
            slot = self.edit_metadata[edit_id]["slot"]
            scale = mask_f32 * self.edit_weights[slot]
        else:
            # Mirrors the PyTorch fall-through: sum over all active slots (also
            # when edit_id is unknown or its slot is inactive).
            activity = jnp.asarray(
                [1.0 if a else 0.0 for a in self._edit_active_host], jnp.float32)
            scale = mask_f32 * (activity @ self.edit_weights)
        self._scale_cache = {cache_key: (edit_mask, scale)}  # single-entry cache
        return scale

    # ------- forward ---------------------------------------------------------
    def forward(self, hidden_states, edit_mask=None, edit_id=None, *,
                fuse_residual_add=False, max_rows_per_tile=None,
                small_bypass_bytes=_SMALL_BYPASS_BYTES):
        if edit_mask is None:
            return hidden_states if fuse_residual_add else jnp.zeros_like(hidden_states)
        scale = self._channel_scale(edit_mask, edit_id)
        if fuse_residual_add:
            # hidden + residual == hidden * (1 + scale): the downstream add fuses
            # into this single HBM pass (cuts total traffic roughly in half).
            scale = scale + 1.0
        return _apply_channel_scale(hidden_states, scale,
                                    max_rows_per_tile=max_rows_per_tile,
                                    small_bypass_bytes=small_bypass_bytes)

    __call__ = forward


# ------------- pure-JAX reference (for correctness check) -------------------
def _reference_forward(hidden, edit_mask, edit_weights, active_bool, slot=None):
    h32 = hidden.astype(jnp.float32)
    masked = h32 * jnp.asarray(edit_mask, jnp.float32)[None, None, :]
    if slot is not None:
        return (masked * edit_weights[slot][None, None, :]).astype(hidden.dtype)
    out = jnp.zeros_like(h32)
    for s in range(edit_weights.shape[0]):
        if bool(active_bool[s]):
            out = out + masked * edit_weights[s][None, None, :]
    return out.astype(hidden.dtype)


if __name__ == "__main__":
    MAX_EDITS = 16
    key = jax.random.PRNGKey(0)
    k_h, k_w1, k_w2, k_m, k_h2 = jax.random.split(key, 5)

    # ---- Test A: small f32 [B,S,H] -> exercises the XLA tiny-stream bypass ----
    B, S, H = 2, 8, 128
    hidden = jax.random.normal(k_h, (B, S, H), jnp.float32)
    layer = ResidualMemoryLayerPallas(hidden_size=H, max_edits=MAX_EDITS)
    mask = (jax.random.uniform(k_m, (H,)) < 0.1).astype(jnp.float32)
    w1 = jax.random.normal(k_w1, (H,), jnp.float32)
    w2 = jax.random.normal(k_w2, (H,), jnp.float32)
    slot_a = layer.add_edit("edit_a", mask, weight_row=w1)
    layer.add_edit("edit_b", mask, weight_row=w2)

    out_multi = jax.block_until_ready(layer(hidden, edit_mask=mask))
    ref_multi = _reference_forward(hidden, mask, layer.edit_weights,
                                   layer._edit_active_host)
    assert jnp.allclose(out_multi, ref_multi, atol=1e-5, rtol=1e-5)

    out_single = jax.block_until_ready(layer(hidden, edit_mask=mask, edit_id="edit_a"))
    ref_single = _reference_forward(hidden, mask, layer.edit_weights,
                                    layer._edit_active_host, slot=slot_a)
    assert jnp.allclose(out_single, ref_single, atol=1e-5, rtol=1e-5)

    out_zero = jax.block_until_ready(layer(hidden, edit_mask=None))
    assert jnp.allclose(out_zero, jnp.zeros_like(hidden))

    # ---- Test B: bf16, force the Pallas kernel path with a multi-step grid ----
    B2, S2, H2 = 2, 512, 256      # N = 1024 rows
    layer2 = ResidualMemoryLayerPallas(hidden_size=H2, max_edits=MAX_EDITS)
    mask2 = (jax.random.uniform(k_m, (H2,)) < 0.1).astype(jnp.float32)
    layer2.add_edit("e1", mask2, weight_row=jax.random.normal(k_w1, (H2,), jnp.float32))
    layer2.add_edit("e2", mask2, weight_row=jax.random.normal(k_w2, (H2,), jnp.float32))
    hidden_bf16 = jax.random.normal(k_h2, (B2, S2, H2), jnp.float32).astype(jnp.bfloat16)

    # Residual-only (module contract); kernel forced; tm=64 (multiple of 16) -> 16 steps.
    out_bf16 = jax.block_until_ready(
        layer2(hidden_bf16, edit_mask=mask2,
               max_rows_per_tile=64, small_bypass_bytes=0))
    ref_bf16 = _reference_forward(hidden_bf16, mask2, layer2.edit_weights,
                                  layer2._edit_active_host)
    assert out_bf16.dtype == jnp.bfloat16
    assert jnp.allclose(out_bf16.astype(jnp.float32), ref_bf16.astype(jnp.float32),
                        atol=7e-2, rtol=7e-2)

    # Kernel with auto tile sizing (>= 4 grid steps) on the single-edit path.
    out_bf16_a = jax.block_until_ready(
        layer2(hidden_bf16, edit_mask=mask2, edit_id="e1", small_bypass_bytes=0))
    ref_bf16_a = _reference_forward(hidden_bf16, mask2, layer2.edit_weights,
                                    layer2._edit_active_host,
                                    slot=layer2.edit_metadata["e1"]["slot"])
    assert jnp.allclose(out_bf16_a.astype(jnp.float32), ref_bf16_a.astype(jnp.float32),
                        atol=7e-2, rtol=7e-2)

    # Fused hidden + residual (single HBM pass via scale + 1).
    out_fused = jax.block_until_ready(
        layer2(hidden_bf16, edit_mask=mask2, fuse_residual_add=True,
               small_bypass_bytes=0))
    ref_fused = hidden_bf16.astype(jnp.float32) + ref_bf16.astype(jnp.float32)
    assert jnp.allclose(out_fused.astype(jnp.float32), ref_fused,
                        atol=1.5e-1, rtol=7e-2)

    print("KERNEL_OK")
</pallas_src>

<mosaic_0001>
module attributes {stable_mosaic.version = 11 : i64} {
  func.func @_scale_mul_kernel(%arg0: i32, %arg1: memref<64x256xbf16, #tpu.memory_space<vmem>>, %arg2: memref<1x256xbf16, #tpu.memory_space<vmem>>, %arg3: memref<64x256xbf16, #tpu.memory_space<vmem>>) attributes {dimension_semantics = [#tpu.dimension_semantics<parallel>], iteration_bounds = array<i64: 16>, scalar_prefetch = 0 : i64, scratch_operands = 0 : i64, tpu.core_type = #tpu.core_type<tc>, window_params = [{transform_indices = @transform_0, window_bounds = array<i64: 64, 256>}, {pipeline_mode = #tpu.pipeline_mode<synchronous>, transform_indices = @transform_1, window_bounds = array<i64: 1, 256>}, {transform_indices = @transform_2, window_bounds = array<i64: 64, 256>}]} {
    %c0 = arith.constant 0 : index
    %c0_0 = arith.constant 0 : index
    %0 = vector.load %arg1[%c0, %c0_0] : memref<64x256xbf16, #tpu.memory_space<vmem>>, vector<64x256xbf16>
    %c0_1 = arith.constant 0 : index
    %c0_2 = arith.constant 0 : index
    %1 = vector.load %arg2[%c0_1, %c0_2] : memref<1x256xbf16, #tpu.memory_space<vmem>>, vector<1x256xbf16>
    %2 = vector.broadcast %1 : vector<1x256xbf16> to vector<64x256xbf16>
    %3 = arith.mulf %0, %2 : vector<64x256xbf16>
    %c0_3 = arith.constant 0 : index
    %c0_4 = arith.constant 0 : index
    %4 = vector.load %arg3[%c0_3, %c0_4] : memref<64x256xbf16, #tpu.memory_space<vmem>>, vector<64x256xbf16>
    tpu.vector_store %arg3[%c0_3, %c0_4], %3 {strides = array<i32>} : memref<64x256xbf16, #tpu.memory_space<vmem>>, vector<64x256xbf16>,
    return
  }
  func.func @transform_0(%arg0: i32) -> (i32, i32) {
    %c0_i32 = arith.constant 0 : i32
    %c0_i32_0 = arith.constant 0 : i32
    return %arg0, %c0_i32 : i32, i32
  }
  func.func @transform_1(%arg0: i32) -> (i32, i32) {
    %c0_i32 = arith.constant 0 : i32
    %c0_i32_0 = arith.constant 0 : i32
    %c0_i32_1 = arith.constant 0 : i32
    return %c0_i32, %c0_i32_0 : i32, i32
  }
  func.func @transform_2(%arg0: i32) -> (i32, i32) {
    %c0_i32 = arith.constant 0 : i32
    %c0_i32_0 = arith.constant 0 : i32
    return %arg0, %c0_i32 : i32, i32
  }
}

</mosaic_0001>

<bundles_post_ra>
// kernel: tpu_custom_call.1
= control target key start
LH: loop header
LB: loop body
LE: loop exit
PB: predicated region body
PF: predicated region fallthrough
CT: control target
= control target key end

     0   :  { %7 = vsyncpa [#allocation3], 0  ;;  %s677_s0 = inlined_call_operand.hbm [shape: bf16[1024,256], index: 0, kind: input, shape index: {}]   ;;  %s678_s1 = inlined_call_operand.vmem [shape: bf16[1,256], index: 1, kind: input, shape index: {}]   ;;  %s679_s2 = inlined_call_operand.hbm [shape: bf16[1024,256], index: 2, kind: output, shape index: {}]  }
   0x1   :  { %9 = vsyncpa [#allocation3 + $0x1], 0 }
   0x2   :  { %10 = vsyncpa [#allocation4], 0 }
   0x3   :  { %12 = vsyncpa [#allocation4 + $0x1], 0  ;;  %s514_s9 = smov 0   ;;  %s516_s10 = smov 0  }
   0x4   :  { %s518_s11 = smov 0   ;;  %s520_s12 = smov 0  }
   0x5 LB: > { %s535_s13 = sadd.s32 4294967295, %s490_s12   ;;  %s321_s14 = sadd.s32 4294967294, %s490_s12   ;;  %s490_s12 = sphi %s520_s12, %s691_s12   ;;  %s486_s11 = sphi %s518_s11, %s690_s11   ;;  %s482_s10 = sphi %s516_s10, %s689_s10   ;;  %s478_s9 = sphi %s514_s9, %s688_s9  }
   0x6   : > { %s539_s15 = sadd.s32 1, %s490_s12   ;;  %s25_s16 = sadd.s32 1, %s486_s11 }
   0x7   : > { %s22_s17 = ssub.s32 %s490_s12, %s539_s15  ;;  %p32_p0 = scmp.ne.s32.totalorder %s486_s11, %s482_s10 }
   0x8   : > { %p23_p1 = scmp.eq.s32.totalorder %s22_s17, 0  ;;  %p33_p2 = scmp.eq.s32.totalorder %s490_s12, 0 }
   0x9   : > { %p38_p3 = scmp.ne.s32.totalorder %s482_s10, %s478_s9  ;;  %p39_p4 = scmp.eq.s32.totalorder %s535_s13, 0 }
   0xa   : > { %s551_s18 = scalar_select %p23_p1, %s486_s11, %s25_s16  }
   0xb   : > { %p553_p5 = por %p33_p2, %p32_p0  ;;  %p557_p6 = por %p39_p4, %p38_p3 }
   0xc   : > { %p83_p7 = scmp.eq.s32.totalorder %s535_s13, 15  ;;  %p89_p8 = scmp.eq.s32.totalorder %s321_s14, 15 }
   0xd   : > { %p355_p9 = scmp.lt.s32.totalorder %s490_s12, 16  ;;  %s112_s23 = sand.u32 1, %s486_s11  }
   0xe   : > { %p563_p10 = por %p83_p7, %p32_p0  ;;  %p567_p11 = por %p89_p8, %p38_p3 }
   0xf   : > { %s340_s24 = sshll.u32 %s490_s12, 10  ;;  %s324_s25 = sshll.u32 %s112_s23, 6 }
  0x10   : > { %s683_s21 = scalar_select %p563_p10, 1, 0 }
  0x11   : > { %s684_s22 = scalar_select %p567_p11, 1, 0 }
  0x12   : > { %s576_s28 = scalar_lea.hbm %s677_s0, %s340_s24  ;;  %s116_s29 = scalar_lea.vmem [#allocation2], %s324_s25 }
  0x13   : > { %s124_s30 = sshll.u32 %s116_s29, 4  ;;  %p580_p12 = pnand %p355_p9, %p553_p5  ;;  %s584_s30 = int_to_ptr.vmem [resolvable:$true] %s124_s30 }
  0x14   : > { %s586_s4 = scalar_lea.sflag [#allocation3], %s112_s23  ;;  %s394_s5 = scalar_lea.hbm %s576_s28, 1024 }
  0x15   : > { %p395_p13 = scmp.ne.s32.totalorder %s576_s28, %s394_s5  ;;  %p396_p0 = pneg %p580_p12 }
  0x16   : > { %s399_s8 = scalar_lea.hbm %s677_s0, 16384  ;;  %p400_p3 = scmp.lt.u32.totalorder %s576_s28, %s677_s0 }
  0x17   : > { %p397_p1 = pnand %p396_p0, %p395_p13  ;;  %p401_p4 = scmp.lt.u32.totalorder %s399_s8, %s394_s5 }
  0x18   : > { %p403_p7 = scmp.lt.u32.totalorder %s394_s5, %s576_s28 }
  0x19   : > { %p398_p2 = pneg %p397_p1  ;;  %p402_p5 = por %p401_p4, %p400_p3 }
  0x1b   : > { %p404_p8 = por %p403_p7, %p402_p5 }
  0x1d   : > { %p405_p9 = pnand %p404_p8, %p398_p2 }
  0x1f   : > { %408 = shalt.err (!%p405_p9)
}
  0x20   : > { %s409_s17 = scalar_lea.vmem %s584_s30, 1024  ;;  %s492_s19 = smov [#allocation2]  }
  0x21   : > { %p410_p13 = scmp.ne.s32.totalorder %s584_s30, %s409_s17  ;;  %s414_s23 = sshll.u32 %s492_s19, 4  ;;  %s415_s23 = int_to_ptr.vmem [resolvable:$false] %s414_s23 }
  0x22   : > { %s416_s24 = scalar_lea.vmem %s415_s23, 2048  ;;  %p417_p10 = scmp.lt.s32.totalorder %s584_s30, %s415_s23 }
  0x23   : > { %p412_p1 = pnand %p410_p13, %p396_p0  ;;  %p418_p3 = scmp.lt.s32.totalorder %s416_s24, %s409_s17 }
  0x25   : > { %p413_p11 = pneg %p412_p1  ;;  %p419_p4 = por %p418_p3, %p417_p10 }
  0x27   : > { %p420_p5 = pnand %p419_p4, %p413_p11 }
  0x29   : > { %423 = shalt.err (!%p420_p5)
}
  0x2a   : > { %s493_s25 = smov 128   ;;  %s494_s26 = smov 8  }
  0x2b   : > { %350 = dma.hbm_to_vmem [thread:$0]  (!%p580_p12), %s576_s28, 1024, %s584_s30, %s586_s4, %s493_s25, %s493_s25, %s494_s26  }
  0x2c   : > { %p328_p0 = scmp.ge.s32.totalorder %s490_s12, 1  ;;  %p132_p2 = scmp.lt.s32.totalorder %s490_s12, 17 }
  0x2e   : > { %p133_p7 = pnand %p328_p0, %p132_p2 }
  0x2f   : > { %s617_s27 = sand.u32 (!%p133_p7), 1, %s482_s10  }
  0x30   : > { %136 = sbr.rel (%p133_p7) target bundleno = 91 (0x5b), region = 28  ;;  %s329_s29 = sshll.u32 (!%p133_p7), %s617_s27, 6 }
  0x31   : > { %s139_s5 = scalar_lea.sflag (!%p133_p7), [#allocation3], %s617_s27  ;;  %s142_s6 = scalar_lea.vmem (!%p133_p7), [#allocation2], %s329_s29 }
  0x37   : > { %469 = dma.done.wait (%p557_p6), %s139_s5, 1024  }
  0x38   : > { %471 = vsyncadd (%p557_p6), %s139_s5, 4294966272  ;;  %v186_v0 = vlaneseq  ;;  %v495_v1 = vmov 1966171168   ;;  %v165_v14 = vld [vmem:[%s142_s6] sm:$0xff]  ;;  %v166_v16 = vld [vmem:[%s142_s6 + $0x8] sm:$0xff]  ;;  %s162_s20 = scalar_lea.vmem [#allocation5], %s329_s29 }
  0x39   : > { %v184_v2 = vunpack.c.l.s4 %v495_v1  ;;  %v331_v6 = vld.sshfl [vmem:[%s678_s1] sm:$0x11 pattern:$0x75316420]  ;;  %s248_s3 = sshll.u32 %s162_s20, 4  ;;  %v167_v17 = vld [vmem:[%s142_s6 + $0x10] sm:$0xff]  ;;  %s629_s3 = int_to_ptr.vmem [resolvable:$true] %s248_s3 }
  0x3a   : > { %v187_v3 = vshrl.u32 %v186_v0, 7  ;;  %v182_v7 = vcombine.high %v331_v6, %v331_v6  ;;  %v168_v18 = vld [vmem:[%s142_s6 + $0x18] sm:$0xff]  ;;  %v169_v19 = vld [vmem:[%s142_s6 + $0x20] sm:$0xff]  ;;  %s342_s4 = sshll.u32 %s535_s13, 10  ;;  %v170_v21 = vld [vmem:[%s142_s6 + $0x28] sm:$0xff]  ;;  %s234_s13 = scalar_lea.sflag [#allocation4], %s617_s27 }
  0x3b   : > { %v185_v4 = vunpack.c.0.s8 %v184_v2  ;;  %v171_v22 = vld [vmem:[%s142_s6 + $0x30] sm:$0xff]  ;;  %v172_v23 = vld [vmem:[%s142_s6 + $0x38] sm:$0xff]  ;;  %s634_s14 = scalar_lea.hbm %s679_s2, %s342_s4  ;;  %s424_s16 = scalar_lea.vmem %s629_s3, 1024 }
  0x3c   : > { %v202_v9 = vsub.s32 0, %v187_v3  ;;  %p425_p6 = scmp.ne.s32.totalorder %s629_s3, %s424_s16  ;;  %p686_p10 = scmp.ne.s32.totalorder %s683_s21, 0 }
  0x3d   : > { %v188_v5 = vsub.s32 %v185_v4, %v187_v3  ;;  %s496_s17 = smov [#allocation5]  }
  0x3e   : > { %p426_p11 = pnand %p425_p6, %p686_p10  ;;  %s428_s19 = sshll.u32 %s496_s17, 4  ;;  %s429_s19 = int_to_ptr.vmem [resolvable:$false] %s428_s19 }
  0x3f   : > { %v189_v8 = vrot.slane %v331_v6, %v188_v5  ;;  %v196_v10 = vrot.slane %v182_v7, %v188_v5  ;;  %s430_s23 = scalar_lea.vmem %s429_s19, 2048  ;;  %p431_p8 = scmp.lt.s32.totalorder %s629_s3, %s429_s19 }
  0x40   : > { %p427_p12 = pneg %p426_p11  ;;  %p432_p9 = scmp.lt.s32.totalorder %s430_s23, %s424_s16 }
  0x41   : > { %v198_v11 = vpack.i.b16 %v189_v8, %v189_v8  ;;  %v205_v13 = vpack.i.b16 %v196_v10, %v196_v10 }
  0x42   : > { %p433_p13 = por %p432_p9, %p431_p8 }
  0x43   : > { %v203_v12 = vrot.slane %v198_v11, %v202_v9  ;;  %v210_v15 = vrot.slane %v205_v13, %v202_v9 }
  0x44   : > { %p434_p1 = pnand %p433_p13, %p427_p12 }
  0x45   : > { %v332_v20 = vcombine.low %v203_v12, %v210_v15 }
  0x47   : > { %v217_v24 = vmul.bf16 %v332_v20, %v165_v14  ;;  %v218_v25 = vmul.bf16 %v332_v20, %v166_v16  ;;  %v219_v26 = vmul.bf16 %v332_v20, %v167_v17  ;;  %v220_v27 = vmul.bf16 %v332_v20, %v168_v18 }
  0x48   : > { %v221_v28 = vmul.bf16 %v332_v20, %v169_v19  ;;  %v222_v29 = vmul.bf16 %v332_v20, %v170_v21  ;;  %v223_v30 = vmul.bf16 %v332_v20, %v171_v22  ;;  %v224_v31 = vmul.bf16 %v332_v20, %v172_v23 }
  0x49   : > { %225 = vst [vmem:[%s162_s20] sm:$0xff] %v217_v24  ;;  %226 = vst [vmem:[%s162_s20 + $0x8] sm:$0xff] %v218_v25 }
  0x4a   : > { %227 = vst [vmem:[%s162_s20 + $0x10] sm:$0xff] %v219_v26  ;;  %228 = vst [vmem:[%s162_s20 + $0x18] sm:$0xff] %v220_v27 }
  0x4b   : > { %229 = vst [vmem:[%s162_s20 + $0x20] sm:$0xff] %v221_v28  ;;  %230 = vst [vmem:[%s162_s20 + $0x28] sm:$0xff] %v222_v29 }
  0x4c   : > { %231 = vst [vmem:[%s162_s20 + $0x30] sm:$0xff] %v223_v30  ;;  %232 = vst [vmem:[%s162_s20 + $0x38] sm:$0xff] %v224_v31 }
  0x4d   : > { %437 = shalt.err (!%p434_p1)
}
  0x4e   : > { %s438_s24 = scalar_lea.hbm %s634_s14, 1024  ;;  %s442_s29 = scalar_lea.hbm %s679_s2, 16384 }
  0x4f   : > { %p439_p3 = scmp.ne.s32.totalorder %s634_s14, %s438_s24  ;;  %p443_p0 = scmp.lt.u32.totalorder %s634_s14, %s679_s2 }
  0x50   : > { %p444_p2 = scmp.lt.u32.totalorder %s442_s29, %s438_s24  ;;  %p446_p6 = scmp.lt.u32.totalorder %s438_s24, %s634_s14 }
  0x51   : > { %p440_p4 = pnand %p439_p3, %p686_p10 }
  0x52   : > { %p445_p7 = por %p444_p2, %p443_p0 }
  0x53   : > { %p441_p5 = pneg %p440_p4 }
  0x54   : > { %p447_p11 = por %p446_p6, %p445_p7 }
  0x56   : > { %p448_p12 = pnand %p447_p11, %p441_p5 }
  0x58   : > { %451 = shalt.err (!%p448_p12)
}
  0x59   : > { %s497_s28 = smov 128   ;;  %s498_s30 = smov 8  }
  0x5a   : > { %345 = dma.vmem_to_hbm [thread:$0]  (%p686_p10), %s629_s3, 1024, %s634_s14, %s234_s13, %s497_s28, %s497_s28, %s498_s30  }
  0x5b PF: > { %p356_p8 = scmp.ge.s32.totalorder %s490_s12, 2  ;;  %s263_s20 = sand.u32 1, %s478_s9  }
  0x5c   : > { %p687_p9 = scmp.ne.s32.totalorder %s684_s22, 0  ;;  %s264_s4 = scalar_lea.sflag [#allocation4], %s263_s20 }
  0x5e   : > { %p352_p13 = pnand %p356_p8, %p687_p9 }
  0x60   : > { %473 = dma.done.wait (!%p352_p13), %s264_s4, 1024  }
  0x61   : > { %475 = vsyncadd (!%p352_p13), %s264_s4, 4294966272  ;;  %p15_p1 = scmp.ge.s32.totalorder %s539_s15, 18   ;;  %s688_s9 = smov %s482_s10 }
  0x62   : > { %s689_s10 = smov %s486_s11  ;;  %s690_s11 = smov %s551_s18 }
  0x63   : > { %s691_s12 = smov %s539_s15  ;;  %17 = sbr.rel (!%p15_p1) target bundleno = 5 (0x5), region = 73 }
  0x6a   :  { %269 = vsyncpa [#allocation3], 1 }
  0x6b   :  { %271 = vsyncpa [#allocation3 + $0x1], 1 }
  0x6c   :  { %272 = vsyncpa [#allocation4], 1 }
  0x6d   :  { %274 = vsyncpa [#allocation4 + $0x1], 1 }

</bundles_post_ra>
